<compile_context>
chip_gen: v7x
topology: tpu7x:2x2x1
jax: 0.10.0
libtpu: 0.0.40
codegen_flags: <defaults>
</compile_context>

<pallas_src>
import functools

import jax
import jax.numpy as jnp
from jax.experimental import pallas as pl
from jax.experimental.pallas import tpu as pltpu

NEG_INF = -1e20


def _round_up(x, m):
    return (x + m - 1) // m * m


def _finalize(out_ref, mask_ref, seq_len):
    """out_ref holds raw scores (1, 1, S_pad); apply mask + softmax over lanes in place."""
    scores = out_ref[...].astype(jnp.float32)                      # (1, 1, S_pad)
    scores = jnp.where(mask_ref[...] != 0, jnp.float32(NEG_INF), scores)
    col = jax.lax.broadcasted_iota(jnp.int32, scores.shape, 2)
    scores = jnp.where(col >= seq_len, -jnp.inf, scores)           # kill S-padding lanes
    m = jnp.max(scores, axis=-1, keepdims=True)
    e = jnp.exp(scores - m)
    denom = jnp.sum(e, axis=-1, keepdims=True)
    out_ref[...] = e / denom                                       # exact divide (once per row)


def _store_scores(out_ref, scores, s_idx, ts):
    off = pl.multiple_of(s_idx * ts, ts)
    out_ref[:, :, pl.ds(off, ts)] = scores[:, None, :]             # lane-dense store


def _dot_kernel(hidden_ref, enc_ref, mask_ref, out_ref, *, seq_len, ts):
    # Serves both 'dot' and (pre-projected) 'general'.
    s = pl.program_id(1)
    # (1, H) @ (H, TS) -> (1, TS)   MXU matvec over H, f32 accumulation
    scores = jnp.dot(hidden_ref[0], enc_ref[0], preferred_element_type=jnp.float32)
    _store_scores(out_ref, scores, s, ts)

    @pl.when(s == pl.num_programs(1) - 1)
    def _():
        _finalize(out_ref, mask_ref, seq_len)


def _concat_kernel(hcol_ref, enc_ref, w2_ref, v_ref, mask_ref, out_ref, *, seq_len, ts):
    # energy = tanh(W1@h + b + W2@e); W1@h + b is hoisted into hcol (wrapper-side).
    s = pl.program_id(1)
    e_part = jnp.dot(w2_ref[...], enc_ref[0],
                     preferred_element_type=jnp.float32)            # (H, TS)  MXU
    energy = jnp.tanh(e_part + hcol_ref[0].astype(jnp.float32))     # EUP tanh, f32
    scores = jnp.dot(v_ref[...].astype(jnp.float32), energy,
                     preferred_element_type=jnp.float32)            # (1, TS)  MXU
    _store_scores(out_ref, scores, s, ts)

    @pl.when(s == pl.num_programs(1) - 1)
    def _():
        _finalize(out_ref, mask_ref, seq_len)


def attn_forward(method, hidden, encoder_outputs, params, attn_mask=None,
                 compute_dtype=None):
    """Pallas implementation of Attn.forward. Returns (B, 1, S) float32.

    compute_dtype: optional dtype (e.g. jnp.bfloat16) for the streamed enc tensor and
    the MXU weight operands; accumulation stays f32. Default: pass the input dtype through.
    """
    S, B, H = encoder_outputs.shape
    dt = jnp.dtype(encoder_outputs.dtype) if compute_dtype is None else jnp.dtype(compute_dtype)

    # Pad H only to the sublane packing multiple (8 for 4-byte, 16 for 2-byte dtypes);
    # blocks carry the full H dim so no 128-divisibility is required.
    h_mult = max(8, 32 // dt.itemsize)
    H_pad = _round_up(H, h_mult)
    S_lane = _round_up(S, 128)
    TS = min(512, S_lane)                 # S-tile (lane) size
    S_pad = _round_up(S, TS)
    num_s = S_pad // TS

    # --- wrapper-side layout plumbing (transpose + pad fuse into one XLA copy) ---
    enc_t = jnp.transpose(encoder_outputs, (1, 2, 0)).astype(dt)             # (B, H, S)
    if H_pad != H or S_pad != S:
        enc_t = jnp.pad(enc_t, ((0, 0), (0, H_pad - H), (0, S_pad - S)))     # (B, H_pad, S_pad)

    hid = hidden[0].astype(jnp.float32)                                      # (B, H)

    if attn_mask is None:
        mask = jnp.zeros((B, 1, S_pad), jnp.int32)
    else:
        mask = jnp.pad(attn_mask.astype(jnp.int32), ((0, 0), (0, S_pad - S)))[:, None, :]

    enc_spec = pl.BlockSpec((1, H_pad, TS), lambda b, s: (b, 0, s))
    hidrow_spec = pl.BlockSpec((1, 1, H_pad), lambda b, s: (b, 0, 0))
    hcol_spec = pl.BlockSpec((1, H_pad, 1), lambda b, s: (b, 0, 0))
    mask_spec = pl.BlockSpec((1, 1, S_pad), lambda b, s: (b, 0, 0))
    out_spec = pl.BlockSpec((1, 1, S_pad), lambda b, s: (b, 0, 0))           # resident over s
    w_spec = pl.BlockSpec((H_pad, H_pad), lambda b, s: (0, 0))
    vrow_spec = pl.BlockSpec((1, H_pad), lambda b, s: (0, 0))

    if method == 'dot':
        hid_q = hid
    elif method == 'general':
        # hidden·(W e + b) == (hidden @ W)·e + hidden·b; the constant cancels under softmax.
        hid_q = hid @ params['w'].astype(jnp.float32)
    elif method == 'concat':
        hid_q = None
    else:
        raise ValueError(method, 'is not an appropriate attention method.')

    if method in ('dot', 'general'):
        hid_row = jnp.pad(hid_q, ((0, 0), (0, H_pad - H)))[:, None, :].astype(dt)  # (B,1,H_pad)
        kernel = _dot_kernel
        args = (hid_row, enc_t, mask)
        in_specs = [hidrow_spec, enc_spec, mask_spec]
        flops = 2 * B * S_pad * H_pad
        trans = B * S_pad
    else:  # concat
        w = params['w'].astype(jnp.float32)                                  # (H, 2H) torch layout
        w1, w2 = w[:, :H], w[:, H:]                                          # hidden / encoder halves
        hcol = hid @ w1.T + params['b'].astype(jnp.float32)                  # (B, H) hoisted (s-invariant)
        hcol = jnp.pad(hcol, ((0, 0), (0, H_pad - H)))[:, :, None]           # (B, H_pad, 1) f32
        w2p = jnp.pad(w2, ((0, H_pad - H), (0, H_pad - H))).astype(dt)       # (H_pad, H_pad)
        v = jnp.pad(params['v'].astype(jnp.float32), (0, H_pad - H))[None, :]  # (1, H_pad) f32
        kernel = _concat_kernel
        args = (hcol, enc_t, w2p, v, mask)
        in_specs = [hcol_spec, enc_spec, w_spec, vrow_spec, mask_spec]
        flops = 2 * B * S_pad * H_pad * H_pad + 2 * B * S_pad * H_pad
        trans = B * S_pad * H_pad + B * S_pad

    bytes_accessed = int(sum(int(a.size) * a.dtype.itemsize for a in args) + B * S_pad * 4)

    out = pl.pallas_call(
        functools.partial(kernel, seq_len=S, ts=TS),
        out_shape=jax.ShapeDtypeStruct((B, 1, S_pad), jnp.float32),
        grid=(B, num_s),
        in_specs=in_specs,
        out_specs=out_spec,
        compiler_params=pltpu.CompilerParams(
            dimension_semantics=("parallel", "arbitrary")),
        cost_estimate=pl.CostEstimate(flops=flops, transcendentals=trans,
                                      bytes_accessed=bytes_accessed),
    )(*args)
    return out[:, :, :S]                                                     # (B, 1, S)


def attn_reference(method, hidden, enc, params, attn_mask=None):
    """Pure-JAX reference mirroring the PyTorch module."""
    if method == 'dot':
        scores = jnp.sum(hidden * enc, axis=2)
    elif method == 'general':
        energy = enc @ params['w'].T + params['b']
        scores = jnp.sum(hidden * energy, axis=2)
    elif method == 'concat':
        cat = jnp.concatenate([jnp.broadcast_to(hidden, enc.shape), enc], axis=2)
        energy = jnp.tanh(cat @ params['w'].T + params['b'])
        scores = jnp.sum(params['v'] * energy, axis=2)
    scores = scores.T
    if attn_mask is not None:
        scores = jnp.where(attn_mask, NEG_INF, scores)
    return jax.nn.softmax(scores, axis=1)[:, None, :]


if __name__ == "__main__":
    B, S, H = 2, 8, 32
    key = jax.random.PRNGKey(0)
    k_hid, k_enc, k_wg, k_bg, k_wc, k_bc, k_v, k_m = jax.random.split(key, 8)

    hidden = jax.random.normal(k_hid, (1, B, H), jnp.float32)
    encoder_outputs = jax.random.normal(k_enc, (S, B, H), jnp.float32)

    # torch Linear stores weight as (out, in)
    params_general = {
        'w': 0.1 * jax.random.normal(k_wg, (H, H), jnp.float32),
        'b': 0.1 * jax.random.normal(k_bg, (H,), jnp.float32),
    }
    params_concat = {
        'w': 0.1 * jax.random.normal(k_wc, (H, 2 * H), jnp.float32),
        'b': 0.1 * jax.random.normal(k_bc, (H,), jnp.float32),
        'v': jax.random.normal(k_v, (H,), jnp.float32),
    }
    attn_mask = (jax.random.uniform(k_m, (B, S)) > 0.7)   # boolean (B, S)

    cases = [
        ('dot', {}, None),
        ('general', params_general, None),
        ('concat', params_concat, None),
        ('dot', {}, attn_mask),
        ('general', params_general, attn_mask),
        ('concat', params_concat, attn_mask),
    ]

    for method, params, mask in cases:
        out = attn_forward(method, hidden, encoder_outputs, params, mask)
        jax.block_until_ready(out)
        ref = attn_reference(method, hidden, encoder_outputs, params, mask)
        assert out.shape == (B, 1, S), (method, out.shape)
        assert jnp.allclose(out, ref, atol=1e-4, rtol=1e-4), f"{method} mismatch"
        # exact division in _finalize => rows sum to 1 up to f32 rounding
        assert jnp.allclose(jnp.sum(out, axis=-1), 1.0, atol=1e-5), f"{method} rows != 1"

    # bf16 streaming/compute smoke test (perf-review item). Accumulation and softmax stay
    # f32, only the MXU operand precision is reduced, so tolerance vs the f32 reference is
    # looser; rows still sum to 1.
    for method, params in [('general', params_general), ('concat', params_concat)]:
        out16 = attn_forward(method, hidden, encoder_outputs, params, attn_mask,
                             compute_dtype=jnp.bfloat16)
        jax.block_until_ready(out16)
        ref = attn_reference(method, hidden, encoder_outputs, params, attn_mask)
        assert out16.shape == (B, 1, S)
        assert jnp.allclose(jnp.sum(out16, axis=-1), 1.0, atol=1e-4)
        assert jnp.allclose(out16, ref, atol=1e-1, rtol=1e-1), f"{method} bf16 mismatch"

    print("KERNEL_OK")
</pallas_src>

<mosaic_0001>
module attributes {stable_mosaic.version = 11 : i64} {
  func.func @_dot_kernel(%arg0: i32, %arg1: i32, %arg2: memref<1x1x32xf32, #tpu.memory_space<vmem>>, %arg3: memref<1x32x128xf32, #tpu.memory_space<vmem>>, %arg4: memref<1x1x128xi32, #tpu.memory_space<vmem>>, %arg5: memref<1x1x128xf32, #tpu.memory_space<vmem>>) attributes {dimension_semantics = [#tpu.dimension_semantics<parallel>, #tpu.dimension_semantics<arbitrary>], iteration_bounds = array<i64: 2, 1>, scalar_prefetch = 0 : i64, scratch_operands = 0 : i64, tpu.core_type = #tpu.core_type<tc>, window_params = [{transform_indices = @transform_0, window_bounds = array<i64: 1, 1, 32>}, {transform_indices = @transform_1, window_bounds = array<i64: 1, 32, 128>}, {transform_indices = @transform_2, window_bounds = array<i64: 1, 1, 128>}, {transform_indices = @transform_3, window_bounds = array<i64: 1, 1, 128>}]} {
    %c0 = arith.constant 0 : index
    %c0_0 = arith.constant 0 : index
    %c0_1 = arith.constant 0 : index
    %0 = vector.load %arg2[%c0, %c0_0, %c0_1] : memref<1x1x32xf32, #tpu.memory_space<vmem>>, vector<1x1x32xf32>
    %1 = vector.shape_cast %0 : vector<1x1x32xf32> to vector<1x32xf32>
    %c0_2 = arith.constant 0 : index
    %c0_3 = arith.constant 0 : index
    %c0_4 = arith.constant 0 : index
    %2 = vector.load %arg3[%c0_2, %c0_3, %c0_4] : memref<1x32x128xf32, #tpu.memory_space<vmem>>, vector<1x32x128xf32>
    %3 = vector.shape_cast %2 : vector<1x32x128xf32> to vector<32x128xf32>
    %cst = arith.constant dense<0.000000e+00> : vector<1x128xf32>
    %4 = tpu.matmul %1, %3, %cst {dimension_numbers = #tpu.dot_dimension_numbers<[1], [0], [0], [1], [0, 0, 1, 1], [], []>} : vector<1x32xf32>, vector<32x128xf32>, vector<1x128xf32> -> vector<1x128xf32>
    %c128_i32 = arith.constant 128 : i32
    %5 = arith.muli %arg1, %c128_i32 : i32
    %6 = tpu.assume_multiple %5, 128 : i32
    %7 = vector.shape_cast %4 : vector<1x128xf32> to vector<1x1x128xf32>
    %c0_5 = arith.constant 0 : index
    %c0_6 = arith.constant 0 : index
    %8 = arith.index_cast %6 : i32 to index
    %9 = vector.load %arg5[%c0_5, %c0_6, %8] : memref<1x1x128xf32, #tpu.memory_space<vmem>>, vector<1x1x128xf32>
    tpu.vector_store %arg5[%c0_5, %c0_6, %8], %7 {strides = array<i32>} : memref<1x1x128xf32, #tpu.memory_space<vmem>>, vector<1x1x128xf32>,
    %c0_i32 = arith.constant 0 : i32
    %10 = arith.cmpi eq, %arg1, %c0_i32 : i32
    %11 = arith.extui %10 : i1 to i32
    %c0_i32_7 = arith.constant 0 : i32
    %12 = arith.cmpi ne, %11, %c0_i32_7 : i32
    scf.if %12 {
      %c0_8 = arith.constant 0 : index
      %c0_9 = arith.constant 0 : index
      %c0_10 = arith.constant 0 : index
      %13 = vector.load %arg5[%c0_8, %c0_9, %c0_10] : memref<1x1x128xf32, #tpu.memory_space<vmem>>, vector<1x1x128xf32>
      %c0_11 = arith.constant 0 : index
      %c0_12 = arith.constant 0 : index
      %c0_13 = arith.constant 0 : index
      %14 = vector.load %arg4[%c0_11, %c0_12, %c0_13] : memref<1x1x128xi32, #tpu.memory_space<vmem>>, vector<1x1x128xi32>
      %c0_i32_14 = arith.constant 0 : i32
      %15 = vector.broadcast %c0_i32_14 : i32 to vector<1x1x128xi32>
      %16 = arith.cmpi ne, %14, %15 : vector<1x1x128xi32>
      %cst_15 = arith.constant -1.000000e+20 : f32
      %17 = vector.broadcast %cst_15 : f32 to vector<1x1x128xf32>
      %18 = arith.select %16, %17, %13 : vector<1x1x128xi1>, vector<1x1x128xf32>
      %19 = tpu.iota {dimensions = array<i32: 2>} : vector<1x1x128xi32>
      %c8_i32 = arith.constant 8 : i32
      %20 = vector.broadcast %c8_i32 : i32 to vector<1x1x128xi32>
      %21 = arith.cmpi sge, %19, %20 : vector<1x1x128xi32>
      %cst_16 = arith.constant 0xFF800000 : f32
      %22 = vector.broadcast %cst_16 : f32 to vector<1x1x128xf32>
      %23 = arith.select %21, %22, %18 : vector<1x1x128xi1>, vector<1x1x128xf32>
      %cst_17 = arith.constant dense<0xFF800000> : vector<1x1xf32>
      %24 = vector.multi_reduction <maximumf>, %23, %cst_17 [2] : vector<1x1x128xf32> to vector<1x1xf32>
      %25 = vector.shape_cast %24 : vector<1x1xf32> to vector<1x1x1xf32>
      %26 = vector.broadcast %25 : vector<1x1x1xf32> to vector<1x1x128xf32>
      %27 = arith.subf %23, %26 : vector<1x1x128xf32>
      %28 = math.exp %27 : vector<1x1x128xf32>
      %cst_18 = arith.constant dense<0.000000e+00> : vector<1x1xf32>
      %29 = vector.multi_reduction <add>, %28, %cst_18 [2] : vector<1x1x128xf32> to vector<1x1xf32>
      %30 = vector.shape_cast %29 : vector<1x1xf32> to vector<1x1x1xf32>
      %31 = vector.broadcast %30 : vector<1x1x1xf32> to vector<1x1x128xf32>
      %32 = arith.divf %28, %31 : vector<1x1x128xf32>
      %c0_19 = arith.constant 0 : index
      %c0_20 = arith.constant 0 : index
      %c0_21 = arith.constant 0 : index
      %33 = vector.load %arg5[%c0_19, %c0_20, %c0_21] : memref<1x1x128xf32, #tpu.memory_space<vmem>>, vector<1x1x128xf32>
      tpu.vector_store %arg5[%c0_19, %c0_20, %c0_21], %32 {strides = array<i32>} : memref<1x1x128xf32, #tpu.memory_space<vmem>>, vector<1x1x128xf32>,
    } else {
    }
    return
  }
  func.func @transform_0(%arg0: i32, %arg1: i32) -> (i32, i32, i32) {
    %c0_i32 = arith.constant 0 : i32
    %c0_i32_0 = arith.constant 0 : i32
    %c0_i32_1 = arith.constant 0 : i32
    return %arg0, %c0_i32, %c0_i32_0 : i32, i32, i32
  }
  func.func @transform_1(%arg0: i32, %arg1: i32) -> (i32, i32, i32) {
    %c0_i32 = arith.constant 0 : i32
    %c0_i32_0 = arith.constant 0 : i32
    return %arg0, %c0_i32, %arg1 : i32, i32, i32
  }
  func.func @transform_2(%arg0: i32, %arg1: i32) -> (i32, i32, i32) {
    %c0_i32 = arith.constant 0 : i32
    %c0_i32_0 = arith.constant 0 : i32
    %c0_i32_1 = arith.constant 0 : i32
    return %arg0, %c0_i32, %c0_i32_0 : i32, i32, i32
  }
  func.func @transform_3(%arg0: i32, %arg1: i32) -> (i32, i32, i32) {
    %c0_i32 = arith.constant 0 : i32
    %c0_i32_0 = arith.constant 0 : i32
    %c0_i32_1 = arith.constant 0 : i32
    return %arg0, %c0_i32, %c0_i32_0 : i32, i32, i32
  }
}

</mosaic_0001>

<bundles_post_ra>
// kernel: tpu_custom_call.1
= control target key start
LH: loop header
LB: loop body
LE: loop exit
PB: predicated region body
PF: predicated region fallthrough
CT: control target
= control target key end

     0   :  { %8 = vsyncpa [#allocation3], 0  ;;  %s999_s0 = inlined_call_operand.hbm [shape: f32[2,1,32], index: 0, kind: input, shape index: {}]   ;;  %s1000_s1 = inlined_call_operand.hbm [shape: f32[2,32,128], index: 1, kind: input, shape index: {}]   ;;  %s1001_s2 = inlined_call_operand.vmem [shape: s32[2,1,128], index: 2, kind: input, shape index: {}]   ;;  %s1002_s3 = inlined_call_operand.hbm [shape: f32[2,1,128], index: 3, kind: output, shape index: {}]  }
   0x1   :  { %10 = vsyncpa [#allocation3 + $0x1], 0 }
   0x2   :  { %11 = vsyncpa [#allocation6], 0 }
   0x3   :  { %13 = vsyncpa [#allocation6 + $0x1], 0 }
   0x4   :  { %14 = vsyncpa [#allocation4], 0 }
   0x5   :  { %16 = vsyncpa [#allocation4 + $0x1], 0  ;;  %s768_s12 = smov 0   ;;  %s770_s13 = smov 0  }
   0x6   :  { %s772_s14 = smov 0   ;;  %s774_s15 = smov 0  }
   0x7   :  { %s776_s16 = smov 0   ;;  %s778_s17 = smov 0  }
   0x8 LB: > { %s479_s18 = sadd.s32 4294967295, %s738_s17   ;;  %s480_s19 = sadd.s32 4294967294, %s738_s17   ;;  %s738_s17 = sphi %s778_s17, %s22_s17   ;;  %s734_s16 = sphi %s776_s16, %s1021_s16   ;;  %s730_s15 = sphi %s774_s15, %s1020_s15   ;;  %s726_s14 = sphi %s772_s14, %s1019_s14   ;;  %s722_s13 = sphi %s770_s13, %s1018_s13   ;;  %s718_s12 = sphi %s768_s12, %s1017_s12  }
   0x9   : > { %s34_s20 = sadd.s32 1, %s734_s16  ;;  %s41_s21 = sadd.s32 1, %s726_s14 }
   0xa   : > { %p36_p0 = scmp.ge.s32.totalorder %s34_s20, 2  ;;  %p48_p1 = scmp.ne.s32.totalorder %s726_s14, %s722_s13 }
   0xb   : > { %p49_p2 = scmp.eq.s32.totalorder %s738_s17, 0  ;;  %p54_p3 = scmp.ne.s32.totalorder %s722_s13, %s718_s12 }
   0xc   : > { %s1023_s20 = smov (%p36_p0, %s34_s20), 0  ;;  %p55_p5 = scmp.eq.s32.totalorder %s479_s18, 0 }
   0xd   : > { %p809_p4 = por %p49_p2, %p48_p1  ;;  %s38_s23 = ssub.s32 %s734_s16, %s1023_s20 }
   0xe   : > { %p132_p6 = scmp.eq.s32.totalorder %s479_s18, 1  ;;  %p39_p7 = scmp.eq.s32.totalorder %s38_s23, 0 }
   0xf   : > { %p815_p8 = por %p55_p5, %p54_p3  ;;  %p138_p10 = scmp.eq.s32.totalorder %s480_s19, 1 }
  0x10   : > { %p819_p9 = por %p132_p6, %p48_p1  ;;  %p533_p13 = scmp.lt.s32.totalorder %s738_s17, 2 }
  0x11   : > { %s1006_s24 = scalar_select %p815_p8, 1, 0 }
  0x12   : > { %s1007_s25 = scalar_select %p819_p9, 1, 0 }
  0x13   : > { %s824_s26 = scalar_select %p39_p7, %s726_s14, %s41_s21  }
  0x14   : > { %p826_p11 = por %p138_p10, %p54_p3  ;;  %s833_s28 = sand.u32 1, %s726_s14  }
  0x15   : > { %s483_s29 = sshll.u32 %s734_s16, 4  ;;  %s161_s30 = scalar_lea.vmem [#allocation2], %s833_s28 }
  0x16   : > { %s1008_s27 = scalar_select %p826_p11, 1, 0 }
  0x17   : > { %s168_s4 = sshll.u32 %s161_s30, 4  ;;  %s840_s7 = scalar_lea.hbm %s999_s0, %s483_s29  ;;  %s842_s4 = int_to_ptr.vmem [resolvable:$true] %s168_s4 }
  0x18   : > { %p846_p0 = pnand %p533_p13, %p809_p4  ;;  %s484_s9 = sshll.u32 %s833_s28, 5 }
  0x19   : > { %s159_s10 = scalar_lea.sflag [#allocation3], %s833_s28  ;;  %s592_s11 = scalar_lea.hbm %s840_s7, 16 }
  0x1a   : > { %p593_p3 = scmp.ne.s32.totalorder %s840_s7, %s592_s11  ;;  %p594_p5 = pneg %p846_p0 }
  0x1b   : > { %s597_s21 = scalar_lea.hbm %s999_s0, 32  ;;  %p598_p4 = scmp.lt.u32.totalorder %s840_s7, %s999_s0 }
  0x1c   : > { %p595_p6 = pnand %p594_p5, %p593_p3  ;;  %p599_p10 = scmp.lt.u32.totalorder %s597_s21, %s592_s11 }
  0x1d   : > { %p601_p12 = scmp.lt.u32.totalorder %s592_s11, %s840_s7 }
  0x1e   : > { %p596_p7 = pneg %p595_p6  ;;  %p600_p13 = por %p599_p10, %p598_p4 }
  0x20   : > { %p602_p1 = por %p601_p12, %p600_p13 }
  0x22   : > { %p603_p2 = pnand %p602_p1, %p596_p7 }
  0x24   : > { %606 = shalt.err (!%p603_p2)
}
  0x25   : > { %s607_s29 = scalar_lea.vmem %s842_s4, 16  ;;  %s740_s30 = smov [#allocation2]  }
  0x26   : > { %p608_p3 = scmp.ne.s32.totalorder %s842_s4, %s607_s29  ;;  %s612_s5 = sshll.u32 %s740_s30, 4  ;;  %s613_s5 = int_to_ptr.vmem [resolvable:$false] %s612_s5 }
  0x27   : > { %s614_s6 = scalar_lea.vmem %s613_s5, 32  ;;  %p615_p9 = scmp.lt.s32.totalorder %s842_s4, %s613_s5 }
  0x28   : > { %p610_p6 = pnand %p608_p3, %p594_p5  ;;  %p616_p4 = scmp.lt.s32.totalorder %s614_s6, %s607_s29 }
  0x2a   : > { %p611_p11 = pneg %p610_p6  ;;  %p617_p10 = por %p616_p4, %p615_p9 }
  0x2c   : > { %p618_p12 = pnand %p617_p10, %p611_p11 }
  0x2e   : > { %621 = shalt.err (!%p618_p12)
}
  0x2f   : > { %525 = dma.hbm_to_vmem [thread:$0]  (!%p846_p0), %s840_s7, 16, %s842_s4, %s159_s10  }
  0x30   : > { %p1010_p1 = scmp.lt.s32.totalorder %s738_s17, 3  ;;  %p1011_p2 = scmp.ge.s32.totalorder %s738_s17, 1 }
  0x31   : > { %s493_s18 = sshll.u32 %s734_s16, 9  ;;  %s179_s19 = scalar_lea.vmem [#allocation5], %s484_s9 }
  0x32   : > { %p883_p7 = pnand %p1011_p2, %p1010_p1  ;;  %s187_s21 = sshll.u32 %s179_s19, 4  ;;  %s895_s21 = int_to_ptr.vmem [resolvable:$true] %s187_s21 }
  0x33   : > { %s893_s29 = scalar_lea.hbm %s1000_s1, %s493_s18  ;;  %s176_s4 = scalar_lea.sflag [#allocation6], %s833_s28 }
  0x34   : > { %s622_s7 = scalar_lea.hbm %s893_s29, 512  ;;  %s627_s30 = scalar_lea.hbm %s1000_s1, 1024 }
  0x35   : > { %p623_p9 = scmp.ne.s32.totalorder %s893_s29, %s622_s7  ;;  %p628_p3 = scmp.lt.u32.totalorder %s893_s29, %s1000_s1 }
  0x36   : > { %p629_p6 = scmp.lt.u32.totalorder %s627_s30, %s622_s7  ;;  %p631_p10 = scmp.lt.u32.totalorder %s622_s7, %s893_s29 }
  0x37   : > { %p625_p11 = pnand %p623_p9, %p594_p5 }
  0x38   : > { %p630_p4 = por %p629_p6, %p628_p3 }
  0x39   : > { %p626_p13 = pneg %p625_p11 }
  0x3a   : > { %p632_p12 = por %p631_p10, %p630_p4 }
  0x3c   : > { %p633_p1 = pnand %p632_p12, %p626_p13 }
  0x3e   : > { %636 = shalt.err (!%p633_p1)
}
  0x3f   : > { %s637_s18 = scalar_lea.vmem %s895_s21, 512  ;;  %s741_s19 = smov [#allocation5]  }
  0x40   : > { %p638_p2 = scmp.ne.s32.totalorder %s895_s21, %s637_s18  ;;  %s642_s22 = sshll.u32 %s741_s19, 4  ;;  %s643_s22 = int_to_ptr.vmem [resolvable:$false] %s642_s22 }
  0x41   : > { %s644_s23 = scalar_lea.vmem %s643_s22, 1024  ;;  %p645_p8 = scmp.lt.s32.totalorder %s895_s21, %s643_s22 }
  0x42   : > { %p640_p9 = pnand %p638_p2, %p594_p5  ;;  %p646_p3 = scmp.lt.s32.totalorder %s644_s23, %s637_s18 }
  0x44   : > { %p641_p11 = pneg %p640_p9  ;;  %p647_p6 = por %p646_p3, %p645_p8 }
  0x46   : > { %p648_p4 = pnand %p647_p6, %p641_p11 }
  0x48   : > { %651 = shalt.err (!%p648_p4)
}
  0x49   : > { %s742_s7 = smov 128   ;;  %s743_s9 = smov 8  }
  0x4a   : > { %528 = dma.hbm_to_vmem [thread:$0]  (!%p846_p0), %s893_s29, 512, %s895_s21, %s176_s4, %s742_s7, %s742_s7, %s743_s9  }
  0x4b   : > { %205 = sbr.rel (%p883_p7) target bundleno = 646 (0x286), region = 32  ;;  %s926_s10 = sand.u32 (!%p883_p7), 1, %s722_s13  }
  0x4c   : > { %s208_s30 = scalar_lea.sflag (!%p883_p7), [#allocation3], %s926_s10  ;;  %s210_s5 = scalar_lea.vmem (!%p883_p7), [#allocation2], %s926_s10 }
  0x4d   : > { %p1013_p8 = scmp.ne.s32.totalorder (!%p883_p7), %s1006_s24, 0 }
  0x52   : > { %705 = dma.done.wait (%p1013_p8), %s208_s30, 16  }
  0x53   : > { %707 = vsyncadd (%p1013_p8), %s208_s30, 4294967280  ;;  %s488_s28 = sshll.u32 %s926_s10, 5  ;;  %s216_s8 = scalar_lea.sflag [#allocation6], %s926_s10 }
  0x54   : > { %s219_s11 = scalar_lea.vmem [#allocation5], %s488_s28 }
  0x55   : > { %709 = dma.done.wait (%p1013_p8), %s216_s8, 512  }
  0x56   : > { %711 = vsyncadd (%p1013_p8), %s216_s8, 4294966784  ;;  %v744_v0 = vmov 0.0|0.0   ;;  %vm745_vm0 = vmmov 0   ;;  %v746_v1 = vmov 0.0   ;;  %v252_v2 = vld [vmem:[%s219_s11] sm:$0xff]  ;;  %v253_v3 = vld [vmem:[%s219_s11 + $0x8] sm:$0xff]  ;;  %v343_v9 = vlaneseq }
  0x57   : > { %510 = vmatprep.subr.bf16.mxu0 %v744_v0  ;;  %507 = vmatprep.mubr.msk.f32.mxu0 %vm745_vm0, %v746_v1  ;;  %v254_v4 = vld [vmem:[%s219_s11 + $0x10] sm:$0xff]  ;;  %v511_v5 = vpack.c.bf16 %v253_v3, %v252_v2  ;;  %v255_v6 = vld [vmem:[%s219_s11 + $0x18] sm:$0xff]  ;;  %vm256_vm1 = vcmask 261120   ;;  %p248_p0 = scmp.lt.s32.totalorder %s730_s15, 1  ;;  %s247_s6 = scalar_lea.vmem [#allocation7], %s926_s10  ;;  %vm347_vm4 = vcmask 1040384  }
  0x58   : > { %v514_v7 = vpack.c.bf16 %v255_v6, %v254_v4  ;;  %v251_v8 = vld [vmem:[%s210_s5] sm:$0x1]  ;;  %v344_v13 = vand.u32 127, %v343_v9  ;;  %s490_s18 = sshll.u32 %s730_s15, 4  ;;  %s373_s19 = sshll.u32 %s247_s6, 4  ;;  %s952_s19 = int_to_ptr.vmem [resolvable:$true] %s373_s19 }
  0x59   : > { %512 = vmatpush3.bf16.msra.mxu0 %v511_v5  ;;  %s249_s24 = scalar_select %p248_p0, %s730_s15, 1 }
  0x5a   : > { %513 = vmatprep.subr.bf16.mxu0 %v744_v0  ;;  %vm345_vm3 = vcmp.ge.s32.totalorder %v344_v13, 8  ;;  %s950_s7 = scalar_lea.hbm %s1002_s3, %s490_s18  ;;  %s361_s9 = scalar_lea.sflag [#allocation4], %s926_s10 }
  0x5b   : > { %s250_s4 = scalar_lea.vmem %s1001_s2, %s249_s24  ;;  %s652_s30 = scalar_lea.vmem %s952_s19, 16 }
  0x5c   : > { %v340_v12 = vld [vmem:[%s250_s4] sm:$0x1]  ;;  %p653_p5 = scmp.ne.s32.totalorder %s952_s19, %s652_s30  ;;  %p1014_p7 = scmp.ne.s32.totalorder %s1007_s25, 0 }
  0x5d   : > { %515 = vmatpush3.bf16.msra.mxu0 %v514_v7  ;;  %vm341_vm2 = vcmp.ne.s32.totalorder %v340_v12, 0  ;;  %s747_s15 = smov [#allocation7]  }
  0x5e   : > { %p654_p13 = pnand %p653_p5, %p1014_p7  ;;  %s656_s5 = sshll.u32 %s747_s15, 4  ;;  %s657_s5 = int_to_ptr.vmem [resolvable:$false] %s656_s5 }
  0x5f   : > { %s658_s28 = scalar_lea.vmem %s657_s5, 32  ;;  %p659_p12 = scmp.lt.s32.totalorder %s952_s19, %s657_s5 }
  0x60   : > { %508 = vmatmul.mubr.msk.f32.vlgmr.msra.gmra.mrb[0].mxu0 %vm256_vm1, %v251_v8  ;;  %p655_p10 = pneg %p654_p13  ;;  %p660_p1 = scmp.lt.s32.totalorder %s658_s28, %s652_s30 }
  0x62   : > { %p661_p2 = por %p660_p1, %p659_p12 }
  0x64   : > { %p662_p9 = pnand %p661_p2, %p655_p10 }
 0x133   : > { %v326_v10 = vpop.f32.mrb[0].mxu0 }
 0x134   : > { %334 = vst [vmem:[%s247_s6] sm:$0x1] %v326_v10  ;;  %v509_v11 = vpop.f32.mrb[1].mxu0 }
 0x13b   : > { %v339_v14 = vld [vmem:[%s247_s6] sm:$0x1] }
 0x13c   : > { %v342_v15 = vsel %vm341_vm2, -1e+20, %v339_v14 }
 0x13d   : > { %v346_v16 = vsel %vm345_vm3, -inf, %v342_v15 }
 0x13e   : > { %v348_v17 = vsel %vm347_vm4, %v346_v16, -inf }
 0x13f   : > { %349 = vmax.xlane.f32.xlu0 %v348_v17 }
 0x1cc   : > { %v350_v18 = vpop.xlane.xlu0 %349 }
 0x1cd   : > { %v351_v19 = vsub.f32 %v346_v16, %v350_v18 }
 0x1cf   : > { %v352_v20 = vmul.f32 1.442695, %v351_v19 }
 0x1d1   : > { %588 = vpow2.f32 %v352_v20 }
 0x1db   : > { %v589_v21 = vpop.eup %588 }
 0x1dc   : > { %v354_v22 = vsel %vm347_vm4, %v589_v21, 0.0 }
 0x1dd   : > { %355 = vadd.xlane.f32.xlu0 %v354_v22 }
 0x26a   : > { %v356_v23 = vpop.xlane.xlu0 %355 }
 0x26b   : > { %590 = vrcp.f32 %v356_v23 }
 0x275   : > { %v591_v24 = vpop.eup %590 }
 0x276   : > { %v358_v25 = vmul.f32 %v591_v24, %v589_v21 }
 0x278   : > { %359 = vst [vmem:[%s247_s6] sm:$0x1] %v358_v25 }
 0x279   : > { %665 = shalt.err (!%p662_p9)
}
 0x27a   : > { %s666_s10 = scalar_lea.hbm %s950_s7, 16  ;;  %s670_s24 = scalar_lea.hbm %s1002_s3, 32 }
 0x27b   : > { %p667_p11 = scmp.ne.s32.totalorder %s950_s7, %s666_s10  ;;  %p671_p4 = scmp.lt.u32.totalorder %s950_s7, %s1002_s3 }
 0x27c   : > { %p672_p8 = scmp.lt.u32.totalorder %s670_s24, %s666_s10  ;;  %p674_p5 = scmp.lt.u32.totalorder %s666_s10, %s950_s7 }
 0x27d   : > { %p668_p3 = pnand %p667_p11, %p1014_p7 }
 0x27e   : > { %p673_p0 = por %p672_p8, %p671_p4 }
 0x27f   : > { %p669_p6 = pneg %p668_p3 }
 0x280   : > { %p675_p13 = por %p674_p5, %p673_p0 }
 0x282   : > { %p676_p10 = pnand %p675_p13, %p669_p6 }
 0x284   : > { %679 = shalt.err (!%p676_p10)
}
 0x285   : > { %520 = dma.vmem_to_hbm [thread:$0]  (%p1014_p7), %s952_s19, 16, %s950_s7, %s361_s9  }
 0x286 PF: > { %s385_s4 = sand.u32 1, %s718_s12   ;;  %p1015_p12 = scmp.ne.s32.totalorder %s1008_s27, 0 }
 0x287   : > { %p1016_p1 = scmp.ge.s32.totalorder %s738_s17, 2  ;;  %s386_s6 = scalar_lea.sflag [#allocation4], %s385_s4 }
 0x289   : > { %p530_p2 = pnand %p1016_p1, %p1015_p12 }
 0x28b   : > { %713 = dma.done.wait (!%p530_p2), %s386_s6, 16  }
 0x28c   : > { %715 = vsyncadd (!%p530_p2), %s386_s6, 4294967280  ;;  %s22_s17 = sadd.s32 1, %s738_s17   ;;  %s1017_s12 = smov %s722_s13 }
 0x28d   : > { %p19_p9 = scmp.ge.s32.totalorder %s22_s17, 4   ;;  %s1018_s13 = smov %s726_s14 }
 0x28e   : > { %s1019_s14 = smov %s824_s26  ;;  %s1020_s15 = smov %s734_s16 }
 0x28f   : > { %s1021_s16 = smov %s1023_s20  ;;  %21 = sbr.rel (!%p19_p9) target bundleno = 8 (0x8), region = 98 }
 0x296   :  { %390 = vsyncpa [#allocation3], 1 }
 0x297   :  { %392 = vsyncpa [#allocation3 + $0x1], 1 }
 0x298   :  { %393 = vsyncpa [#allocation6], 1 }
 0x299   :  { %395 = vsyncpa [#allocation6 + $0x1], 1 }
 0x29a   :  { %396 = vsyncpa [#allocation4], 1 }
 0x29b   :  { %398 = vsyncpa [#allocation4 + $0x1], 1 }

</bundles_post_ra>
